<compile_context>
chip_gen: v7x
topology: tpu7x:2x2x1
jax: 0.10.0
libtpu: 0.0.40
codegen_flags: <defaults>
</compile_context>

<pallas_src>
import numpy as np
import jax
import jax.numpy as jnp
from jax.experimental import pallas as pl
from jax.experimental.pallas import tpu as pltpu


# ----------------------------------------------------------------------------
# Host-side constant builders (numpy, built once per shape)
# ----------------------------------------------------------------------------
def adaptive_pool_matrix(n_in, n_out):
    """Row matrix implementing nn.AdaptiveAvgPool semantics along one axis."""
    m = np.zeros((n_out, n_in), dtype=np.float32)
    for i in range(n_out):
        start = (i * n_in) // n_out
        end = -((-(i + 1) * n_in) // n_out)            # ceil((i+1)*n_in/n_out)
        m[i, start:end] = 1.0 / float(end - start)
    return m


def dft2_matrices(H, W):
    """Precombined 2-D real-DFT matrices on flattened spatial dims.

    FR, FI : (H*W, H*Wf)  real / imaginary parts of rfft2
    INV    : (H*Wf, H*W)  irfft2 of a purely-real one-sided spectrum
    O((H*W)^2) memory — fine for 16x16; for large H, W use separable matmuls.
    """
    Wf = W // 2 + 1
    h = np.arange(H, dtype=np.float64)
    w = np.arange(W, dtype=np.float64)
    u = np.arange(H, dtype=np.float64)
    v = np.arange(Wf, dtype=np.float64)

    ang = 2.0 * np.pi * (np.einsum('h,u->hu', h, u)[:, None, :, None] / H
                         + np.einsum('w,v->wv', w, v)[None, :, None, :] / W)
    FR = np.cos(ang).reshape(H * W, H * Wf)
    FI = (-np.sin(ang)).reshape(H * W, H * Wf)

    coef = np.full(Wf, 2.0)                            # Hermitian doubling along W
    coef[0] = 1.0
    if W % 2 == 0:
        coef[-1] = 1.0
    CHi = np.cos(2.0 * np.pi * np.outer(h, u) / H) / H               # (H, H)
    SHi = np.sin(2.0 * np.pi * np.outer(h, u) / H) / H
    CWi = coef[:, None] * np.cos(2.0 * np.pi * np.outer(v, w) / W) / W   # (Wf, W)
    SWi = coef[:, None] * np.sin(2.0 * np.pi * np.outer(v, w) / W) / W
    INV = (np.einsum('hu,vw->uvhw', CHi, CWi)
           - np.einsum('hu,vw->uvhw', SHi, SWi)).reshape(H * Wf, H * W)
    return FR, FI, INV


def pool_fc_matrix(Wt, C, H, Wf, s):
    """Fold AdaptiveAvgPool2d(s) + flatten + Linear into one (H*Wf, C*C) matrix.

    Column index c*C + o = contribution of input channel c's spectrum to
    output channel o (the kernel keeps only the c == actual-channel block).
    """
    PH = adaptive_pool_matrix(H, s)                    # (s, H)
    PW = adaptive_pool_matrix(Wf, s)                   # (s, Wf)
    W4 = np.asarray(Wt, dtype=np.float64).reshape(C, C, s, s)       # (o, c, i, j)
    M = np.einsum('ocij,iu,jv->uvco', W4, PH, PW)                    # (H, Wf, c, o)
    return M.reshape(H * Wf, C * C).astype(np.float32)


def selection_constants(B, C, S):
    """Tiny constant matrices replacing in-kernel reshapes on (B*C, .) data."""
    BC, CC = B * C, C * C
    bc = np.arange(BC)
    batch, chan = bc // C, bc % C
    col = np.arange(CC)

    Pbb = (batch[:, None] == batch[None, :]).astype(np.float32)        # (BC, BC)
    Scol = (col[:, None] % C == np.arange(C)[None, :]).astype(np.float32)   # (CC, C)
    Scol_all = np.kron(np.eye(S, dtype=np.float32), Scol)              # (S*CC, S*C)
    dmask = (col[None, :] // C == chan[:, None]).astype(np.float32)    # (BC, CC)
    dmask_all = np.tile(dmask, (1, S))                                  # (BC, S*CC)
    cmask = (np.arange(C)[None, :] == chan[:, None]).astype(np.float32)  # (BC, C)
    cmask_all = np.tile(cmask, (1, S))                                   # (BC, S*C)
    return Pbb, Scol_all, dmask_all, cmask_all


# ----------------------------------------------------------------------------
# Pallas kernel: whole (B, C, H, W) problem in one grid step, fully batched
# ----------------------------------------------------------------------------
def _msfa_kernel(x_ref, fr_ref, fi_ref, inv_ref, pbb_ref, scol_ref,
                 dmask_ref, cmask_ref, mall_ref, ball_ref, out_ref):
    f32 = jnp.float32

    # ---- |rfft2(x)| for all (b, c) at once: two bf16 MXU matmuls -------------
    xb = x_ref[...]                                               # (BC, HW) bf16
    zr = jnp.dot(xb, fr_ref[...], preferred_element_type=f32)     # (BC, HWf)
    zi = jnp.dot(xb, fi_ref[...], preferred_element_type=f32)
    mag = jnp.sqrt(zr * zr + zi * zi)                             # f32

    # ---- all scales' pooled FC fused into ONE matmul -------------------------
    p = jnp.dot(mag, mall_ref[...], preferred_element_type=f32)   # (BC, S*C*C)
    p = p * dmask_ref[...]                                        # keep c == row-chan
    pre = jnp.dot(pbb_ref[...], p, preferred_element_type=f32)    # batch-sum, (BC, S*C*C)
    pre = jnp.dot(pre, scol_ref[...], preferred_element_type=f32)  # fold c -> o, (BC, S*C)
    sig = 1.0 / (1.0 + jnp.exp(-(pre + ball_ref[...])))           # sigmoid, (BC, S*C)

    # per-row attention scalar = sum over scales of sig[., o == row-channel]
    att_col = jnp.sum(sig * cmask_ref[...], axis=1, keepdims=True)  # (BC, 1)

    # ---- attention-scaled magnitude -> irfft2 (one bf16 matmul) --------------
    z = (mag * att_col).astype(xb.dtype)
    out_ref[...] = jnp.dot(z, inv_ref[...], preferred_element_type=f32)


# ----------------------------------------------------------------------------
# Wrapper
# ----------------------------------------------------------------------------
def multi_scale_frequency_attention(x, fc_weights, fc_biases, pool_sizes=(1, 2, 4)):
    B, C, H, W = x.shape
    Wf = W // 2 + 1
    HW, BC, S = H * W, B * C, len(pool_sizes)

    FR, FI, INV = dft2_matrices(H, W)
    Pbb, Scol_all, dmask_all, cmask_all = selection_constants(B, C, S)

    mats = [pool_fc_matrix(np.asarray(Wt), C, H, Wf, s)
            for s, Wt in zip(pool_sizes, fc_weights)]
    M_all = np.concatenate(mats, axis=1)                              # (H*Wf, S*C*C)
    bias_all = np.concatenate(
        [np.asarray(b, dtype=np.float32).reshape(1, C) for b in fc_biases],
        axis=1)                                                        # (1, S*C)

    # Lane-dense input layout: (B*C, H*W), bf16 operands for the MXU.
    x2 = x.reshape(BC, HW).astype(jnp.bfloat16)

    args = [x2,
            jnp.asarray(FR, jnp.bfloat16), jnp.asarray(FI, jnp.bfloat16),
            jnp.asarray(INV, jnp.bfloat16),
            jnp.asarray(Pbb), jnp.asarray(Scol_all),
            jnp.asarray(dmask_all), jnp.asarray(cmask_all),
            jnp.asarray(M_all), jnp.asarray(bias_all)]

    y2 = pl.pallas_call(
        _msfa_kernel,
        out_shape=jax.ShapeDtypeStruct((BC, HW), jnp.float32),
        grid=(1,),                                    # whole problem fits VMEM (<1 MiB)
        in_specs=[pl.BlockSpec(a.shape, lambda i: (0, 0)) for a in args],
        out_specs=pl.BlockSpec((BC, HW), lambda i: (0, 0)),   # lane-dense output
        compiler_params=pltpu.CompilerParams(
            dimension_semantics=("arbitrary",),
            vmem_limit_bytes=32 * 1024 * 1024,
        ),
    )(*args)
    return y2.reshape(B, C, H, W)


# ----------------------------------------------------------------------------
# Pure-JAX reference (same semantics, uses jnp.fft)
# ----------------------------------------------------------------------------
def msfa_reference(x, fc_weights, fc_biases, pool_sizes=(1, 2, 4)):
    B, C, H, W = x.shape
    mag = jnp.abs(jnp.fft.rfft2(x))                   # (B, C, H, Wf)
    att = jnp.zeros((B, C), jnp.float32)
    for s, Wt, bias in zip(pool_sizes, fc_weights, fc_biases):
        ph = jnp.asarray(adaptive_pool_matrix(H, s))
        pw = jnp.asarray(adaptive_pool_matrix(W // 2 + 1, s))
        pooled = jnp.einsum('iu,bcuv,jv->bcij', ph, mag, pw)
        flat = pooled.reshape(B, -1)
        att = att + jax.nn.sigmoid(flat @ Wt.T + bias)
    z = mag * att[:, :, None, None]
    return jnp.fft.irfft2(z, s=(H, W)).astype(jnp.float32)


if __name__ == "__main__":
    B, C, H, W = 2, 8, 16, 16                         # in_channels = 8
    pool_sizes = (1, 2, 4)

    key = jax.random.PRNGKey(0)
    keys = jax.random.split(key, 1 + 2 * len(pool_sizes))
    x = jax.random.normal(keys[0], (B, C, H, W), dtype=jnp.float32)

    # TODO(synk): the reference __init__ declares Linear(C//16, C) plus a 1x1 conv
    # that forward never uses; forward actually feeds the Linear a flattened C*s*s
    # vector, so we size the Linear accordingly and omit the unused conv.
    fc_weights, fc_biases = [], []
    for idx, s in enumerate(pool_sizes):
        k_in = C * s * s
        bound = 1.0 / float(np.sqrt(k_in))
        kw, kb = keys[1 + 2 * idx], keys[2 + 2 * idx]
        fc_weights.append(jax.random.uniform(kw, (C, k_in), jnp.float32, -bound, bound))
        fc_biases.append(jax.random.uniform(kb, (C,), jnp.float32, -bound, bound))

    out = multi_scale_frequency_attention(x, fc_weights, fc_biases, pool_sizes)
    out = jax.block_until_ready(out)

    ref = msfa_reference(x, fc_weights, fc_biases, pool_sizes)
    np.testing.assert_allclose(np.asarray(out), np.asarray(ref), rtol=5e-2, atol=5e-2)
    print("KERNEL_OK")
</pallas_src>

<mosaic_0001>
module attributes {stable_mosaic.version = 11 : i64} {
  func.func @_msfa_kernel(%arg0: i32, %arg1: memref<16x256xbf16, #tpu.memory_space<vmem>>, %arg2: memref<256x144xbf16, #tpu.memory_space<vmem>>, %arg3: memref<256x144xbf16, #tpu.memory_space<vmem>>, %arg4: memref<144x256xbf16, #tpu.memory_space<vmem>>, %arg5: memref<16x16xf32, #tpu.memory_space<vmem>>, %arg6: memref<192x24xf32, #tpu.memory_space<vmem>>, %arg7: memref<16x192xf32, #tpu.memory_space<vmem>>, %arg8: memref<16x24xf32, #tpu.memory_space<vmem>>, %arg9: memref<144x192xf32, #tpu.memory_space<vmem>>, %arg10: memref<1x24xf32, #tpu.memory_space<vmem>>, %arg11: memref<16x256xf32, #tpu.memory_space<vmem>>) attributes {dimension_semantics = [#tpu.dimension_semantics<arbitrary>], iteration_bounds = array<i64: 1>, scalar_prefetch = 0 : i64, scratch_operands = 0 : i64, tpu.core_type = #tpu.core_type<tc>, window_params = [{pipeline_mode = #tpu.pipeline_mode<synchronous>, transform_indices = @transform_0, window_bounds = array<i64: 16, 256>}, {pipeline_mode = #tpu.pipeline_mode<synchronous>, transform_indices = @transform_1, window_bounds = array<i64: 256, 144>}, {pipeline_mode = #tpu.pipeline_mode<synchronous>, transform_indices = @transform_2, window_bounds = array<i64: 256, 144>}, {pipeline_mode = #tpu.pipeline_mode<synchronous>, transform_indices = @transform_3, window_bounds = array<i64: 144, 256>}, {pipeline_mode = #tpu.pipeline_mode<synchronous>, transform_indices = @transform_4, window_bounds = array<i64: 16, 16>}, {pipeline_mode = #tpu.pipeline_mode<synchronous>, transform_indices = @transform_5, window_bounds = array<i64: 192, 24>}, {pipeline_mode = #tpu.pipeline_mode<synchronous>, transform_indices = @transform_6, window_bounds = array<i64: 16, 192>}, {pipeline_mode = #tpu.pipeline_mode<synchronous>, transform_indices = @transform_7, window_bounds = array<i64: 16, 24>}, {pipeline_mode = #tpu.pipeline_mode<synchronous>, transform_indices = @transform_8, window_bounds = array<i64: 144, 192>}, {pipeline_mode = #tpu.pipeline_mode<synchronous>, transform_indices = @transform_9, window_bounds = array<i64: 1, 24>}, {pipeline_mode = #tpu.pipeline_mode<synchronous>, transform_indices = @transform_10, window_bounds = array<i64: 16, 256>}]} {
    %c0 = arith.constant 0 : index
    %c0_0 = arith.constant 0 : index
    %0 = vector.load %arg1[%c0, %c0_0] : memref<16x256xbf16, #tpu.memory_space<vmem>>, vector<16x256xbf16>
    %c0_1 = arith.constant 0 : index
    %c0_2 = arith.constant 0 : index
    %1 = vector.load %arg2[%c0_1, %c0_2] : memref<256x144xbf16, #tpu.memory_space<vmem>>, vector<256x144xbf16>
    %cst = arith.constant dense<0.000000e+00> : vector<16x144xf32>
    %2 = tpu.matmul %0, %1, %cst {dimension_numbers = #tpu.dot_dimension_numbers<[1], [0], [0], [1], [0, 0, 1, 1], [], []>} : vector<16x256xbf16>, vector<256x144xbf16>, vector<16x144xf32> -> vector<16x144xf32>
    %c0_3 = arith.constant 0 : index
    %c0_4 = arith.constant 0 : index
    %3 = vector.load %arg3[%c0_3, %c0_4] : memref<256x144xbf16, #tpu.memory_space<vmem>>, vector<256x144xbf16>
    %cst_5 = arith.constant dense<0.000000e+00> : vector<16x144xf32>
    %4 = tpu.matmul %0, %3, %cst_5 {dimension_numbers = #tpu.dot_dimension_numbers<[1], [0], [0], [1], [0, 0, 1, 1], [], []>} : vector<16x256xbf16>, vector<256x144xbf16>, vector<16x144xf32> -> vector<16x144xf32>
    %5 = arith.mulf %2, %2 : vector<16x144xf32>
    %6 = arith.mulf %4, %4 : vector<16x144xf32>
    %7 = arith.addf %5, %6 : vector<16x144xf32>
    %8 = math.sqrt %7 : vector<16x144xf32>
    %c0_6 = arith.constant 0 : index
    %c0_7 = arith.constant 0 : index
    %9 = vector.load %arg9[%c0_6, %c0_7] : memref<144x192xf32, #tpu.memory_space<vmem>>, vector<144x192xf32>
    %cst_8 = arith.constant dense<0.000000e+00> : vector<16x192xf32>
    %10 = tpu.matmul %8, %9, %cst_8 {dimension_numbers = #tpu.dot_dimension_numbers<[1], [0], [0], [1], [0, 0, 1, 1], [], []>} : vector<16x144xf32>, vector<144x192xf32>, vector<16x192xf32> -> vector<16x192xf32>
    %c0_9 = arith.constant 0 : index
    %c0_10 = arith.constant 0 : index
    %11 = vector.load %arg7[%c0_9, %c0_10] : memref<16x192xf32, #tpu.memory_space<vmem>>, vector<16x192xf32>
    %12 = arith.mulf %10, %11 : vector<16x192xf32>
    %c0_11 = arith.constant 0 : index
    %c0_12 = arith.constant 0 : index
    %13 = vector.load %arg5[%c0_11, %c0_12] : memref<16x16xf32, #tpu.memory_space<vmem>>, vector<16x16xf32>
    %cst_13 = arith.constant dense<0.000000e+00> : vector<16x192xf32>
    %14 = tpu.matmul %13, %12, %cst_13 {dimension_numbers = #tpu.dot_dimension_numbers<[1], [0], [0], [1], [0, 0, 1, 1], [], []>} : vector<16x16xf32>, vector<16x192xf32>, vector<16x192xf32> -> vector<16x192xf32>
    %c0_14 = arith.constant 0 : index
    %c0_15 = arith.constant 0 : index
    %15 = vector.load %arg6[%c0_14, %c0_15] : memref<192x24xf32, #tpu.memory_space<vmem>>, vector<192x24xf32>
    %cst_16 = arith.constant dense<0.000000e+00> : vector<16x24xf32>
    %16 = tpu.matmul %14, %15, %cst_16 {dimension_numbers = #tpu.dot_dimension_numbers<[1], [0], [0], [1], [0, 0, 1, 1], [], []>} : vector<16x192xf32>, vector<192x24xf32>, vector<16x24xf32> -> vector<16x24xf32>
    %c0_17 = arith.constant 0 : index
    %c0_18 = arith.constant 0 : index
    %17 = vector.load %arg10[%c0_17, %c0_18] : memref<1x24xf32, #tpu.memory_space<vmem>>, vector<1x24xf32>
    %18 = vector.broadcast %17 : vector<1x24xf32> to vector<16x24xf32>
    %19 = arith.addf %16, %18 : vector<16x24xf32>
    %cst_19 = arith.constant 0.000000e+00 : f32
    %20 = vector.broadcast %cst_19 : f32 to vector<16x24xf32>
    %21 = arith.subf %20, %19 : vector<16x24xf32>
    %22 = math.exp %21 : vector<16x24xf32>
    %cst_20 = arith.constant 1.000000e+00 : f32
    %23 = vector.broadcast %cst_20 : f32 to vector<16x24xf32>
    %24 = arith.addf %23, %22 : vector<16x24xf32>
    %cst_21 = arith.constant 1.000000e+00 : f32
    %25 = vector.broadcast %cst_21 : f32 to vector<16x24xf32>
    %26 = arith.divf %25, %24 : vector<16x24xf32>
    %c0_22 = arith.constant 0 : index
    %c0_23 = arith.constant 0 : index
    %27 = vector.load %arg8[%c0_22, %c0_23] : memref<16x24xf32, #tpu.memory_space<vmem>>, vector<16x24xf32>
    %28 = arith.mulf %26, %27 : vector<16x24xf32>
    %cst_24 = arith.constant dense<0.000000e+00> : vector<16xf32>
    %29 = vector.multi_reduction <add>, %28, %cst_24 [1] : vector<16x24xf32> to vector<16xf32>
    %30 = vector.shape_cast %29 : vector<16xf32> to vector<16x1xf32>
    %31 = vector.broadcast %30 : vector<16x1xf32> to vector<16x144xf32>
    %32 = arith.mulf %8, %31 : vector<16x144xf32>
    %33 = arith.truncf %32 : vector<16x144xf32> to vector<16x144xbf16>
    %c0_25 = arith.constant 0 : index
    %c0_26 = arith.constant 0 : index
    %34 = vector.load %arg4[%c0_25, %c0_26] : memref<144x256xbf16, #tpu.memory_space<vmem>>, vector<144x256xbf16>
    %cst_27 = arith.constant dense<0.000000e+00> : vector<16x256xf32>
    %35 = tpu.matmul %33, %34, %cst_27 {dimension_numbers = #tpu.dot_dimension_numbers<[1], [0], [0], [1], [0, 0, 1, 1], [], []>} : vector<16x144xbf16>, vector<144x256xbf16>, vector<16x256xf32> -> vector<16x256xf32>
    %c0_28 = arith.constant 0 : index
    %c0_29 = arith.constant 0 : index
    %36 = vector.load %arg11[%c0_28, %c0_29] : memref<16x256xf32, #tpu.memory_space<vmem>>, vector<16x256xf32>
    tpu.vector_store %arg11[%c0_28, %c0_29], %35 {strides = array<i32>} : memref<16x256xf32, #tpu.memory_space<vmem>>, vector<16x256xf32>,
    return
  }
  func.func @transform_0(%arg0: i32) -> (i32, i32) {
    %c0_i32 = arith.constant 0 : i32
    %c0_i32_0 = arith.constant 0 : i32
    %c0_i32_1 = arith.constant 0 : i32
    return %c0_i32, %c0_i32_0 : i32, i32
  }
  func.func @transform_1(%arg0: i32) -> (i32, i32) {
    %c0_i32 = arith.constant 0 : i32
    %c0_i32_0 = arith.constant 0 : i32
    %c0_i32_1 = arith.constant 0 : i32
    return %c0_i32, %c0_i32_0 : i32, i32
  }
  func.func @transform_2(%arg0: i32) -> (i32, i32) {
    %c0_i32 = arith.constant 0 : i32
    %c0_i32_0 = arith.constant 0 : i32
    %c0_i32_1 = arith.constant 0 : i32
    return %c0_i32, %c0_i32_0 : i32, i32
  }
  func.func @transform_3(%arg0: i32) -> (i32, i32) {
    %c0_i32 = arith.constant 0 : i32
    %c0_i32_0 = arith.constant 0 : i32
    %c0_i32_1 = arith.constant 0 : i32
    return %c0_i32, %c0_i32_0 : i32, i32
  }
  func.func @transform_4(%arg0: i32) -> (i32, i32) {
    %c0_i32 = arith.constant 0 : i32
    %c0_i32_0 = arith.constant 0 : i32
    %c0_i32_1 = arith.constant 0 : i32
    return %c0_i32, %c0_i32_0 : i32, i32
  }
  func.func @transform_5(%arg0: i32) -> (i32, i32) {
    %c0_i32 = arith.constant 0 : i32
    %c0_i32_0 = arith.constant 0 : i32
    %c0_i32_1 = arith.constant 0 : i32
    return %c0_i32, %c0_i32_0 : i32, i32
  }
  func.func @transform_6(%arg0: i32) -> (i32, i32) {
    %c0_i32 = arith.constant 0 : i32
    %c0_i32_0 = arith.constant 0 : i32
    %c0_i32_1 = arith.constant 0 : i32
    return %c0_i32, %c0_i32_0 : i32, i32
  }
  func.func @transform_7(%arg0: i32) -> (i32, i32) {
    %c0_i32 = arith.constant 0 : i32
    %c0_i32_0 = arith.constant 0 : i32
    %c0_i32_1 = arith.constant 0 : i32
    return %c0_i32, %c0_i32_0 : i32, i32
  }
  func.func @transform_8(%arg0: i32) -> (i32, i32) {
    %c0_i32 = arith.constant 0 : i32
    %c0_i32_0 = arith.constant 0 : i32
    %c0_i32_1 = arith.constant 0 : i32
    return %c0_i32, %c0_i32_0 : i32, i32
  }
  func.func @transform_9(%arg0: i32) -> (i32, i32) {
    %c0_i32 = arith.constant 0 : i32
    %c0_i32_0 = arith.constant 0 : i32
    %c0_i32_1 = arith.constant 0 : i32
    return %c0_i32, %c0_i32_0 : i32, i32
  }
  func.func @transform_10(%arg0: i32) -> (i32, i32) {
    %c0_i32 = arith.constant 0 : i32
    %c0_i32_0 = arith.constant 0 : i32
    %c0_i32_1 = arith.constant 0 : i32
    return %c0_i32, %c0_i32_0 : i32, i32
  }
}

</mosaic_0001>

<bundles_post_ra>
// kernel: tpu_custom_call.1
= control target key start
LH: loop header
LB: loop body
LE: loop exit
PB: predicated region body
PF: predicated region fallthrough
CT: control target
= control target key end

     0   :  { %s1979_s0 = inlined_call_operand.vmem [shape: bf16[16,256], index: 0, kind: input, shape index: {}]   ;;  %s1980_s1 = inlined_call_operand.vmem [shape: bf16[256,144], index: 1, kind: input, shape index: {}]   ;;  %s1981_s2 = inlined_call_operand.vmem [shape: bf16[256,144], index: 2, kind: input, shape index: {}]   ;;  %s1982_s3 = inlined_call_operand.vmem [shape: bf16[144,256], index: 3, kind: input, shape index: {}]   ;;  %s1983_s4 = inlined_call_operand.vmem [shape: f32[16,16], index: 4, kind: input, shape index: {}]   ;;  %s1984_s5 = inlined_call_operand.vmem [shape: f32[192,24], index: 5, kind: input, shape index: {}]   ;;  %s1985_s6 = inlined_call_operand.vmem [shape: f32[16,192], index: 6, kind: input, shape index: {}]   ;;  %s1986_s7 = inlined_call_operand.vmem [shape: f32[16,24], index: 7, kind: input, shape index: {}]   ;;  %s1987_s8 = inlined_call_operand.vmem [shape: f32[144,192], index: 8, kind: input, shape index: {}]   ;;  %s1988_s9 = inlined_call_operand.vmem [shape: f32[1,24], index: 9, kind: input, shape index: {}]   ;;  %s1989_s10 = inlined_call_operand.hbm [shape: f32[16,256], index: 10, kind: output, shape index: {}]  }
   0x1   :  { %v1261_v0 = vld [vmem:[%s1980_s1 + $0x4] ss:$8 sps:$4 sm:$0xff]   ;;  %v1265_v2 = vld [vmem:[%s1980_s1] ss:$8 sps:$4 sm:$0xff]   ;;  %v1267_v4 = vld [vmem:[%s1980_s1 + $0x14] ss:$8 sps:$4 sm:$0xff]  }
   0x2   :  { %v1263_v1 = vld [vmem:[%s1981_s2 + $0x4] ss:$8 sps:$4 sm:$0xff]   ;;  %241 = vmatprep.subr.bf16.mxu0 %v1261_v0  ;;  %v1266_v3 = vld [vmem:[%s1981_s2] ss:$8 sps:$4 sm:$0xff]   ;;  %v1269_v5 = vld [vmem:[%s1981_s2 + $0x14] ss:$8 sps:$4 sm:$0xff]  }
   0x3   :  { %476 = vmatprep.subr.bf16.mxu1 %v1263_v1  ;;  %242 = vmatpush1.bf16.msra.mxu0 %v1265_v2  ;;  %v1271_v6 = vld [vmem:[%s1980_s1 + $0x10] ss:$8 sps:$4 sm:$0xff]   ;;  %v1273_v8 = vld [vmem:[%s1980_s1 + $0x24] ss:$8 sps:$4 sm:$0xff]   ;;  %v1277_v10 = vld [vmem:[%s1980_s1 + $0x20] ss:$8 sps:$4 sm:$0xff]  }
   0x4   :  { %477 = vmatpush1.bf16.msra.mxu1 %v1266_v3  ;;  %243 = vmatprep.subr.bf16.mxu0 %v1267_v4  ;;  %v1272_v7 = vld [vmem:[%s1981_s2 + $0x10] ss:$8 sps:$4 sm:$0xff]   ;;  %v1275_v9 = vld [vmem:[%s1981_s2 + $0x24] ss:$8 sps:$4 sm:$0xff]   ;;  %v1278_v11 = vld [vmem:[%s1981_s2 + $0x20] ss:$8 sps:$4 sm:$0xff]  }
   0x5   :  { %478 = vmatprep.subr.bf16.mxu1 %v1269_v5  ;;  %v1279_v12 = vld [vmem:[%s1980_s1 + $0x34] ss:$8 sps:$4 sm:$0xff]   ;;  %v1283_v14 = vld [vmem:[%s1980_s1 + $0x30] ss:$8 sps:$4 sm:$0xff]   ;;  %v1285_v16 = vld [vmem:[%s1980_s1 + $0x44] ss:$8 sps:$4 sm:$0xff]  }
   0x6   :  { %v1281_v13 = vld [vmem:[%s1981_s2 + $0x34] ss:$8 sps:$4 sm:$0xff]   ;;  %v1284_v15 = vld [vmem:[%s1981_s2 + $0x30] ss:$8 sps:$4 sm:$0xff]   ;;  %v1287_v17 = vld [vmem:[%s1981_s2 + $0x44] ss:$8 sps:$4 sm:$0xff]  }
   0x7   :  { %244 = vmatpush1.bf16.msra.mxu0 %v1271_v6  ;;  %v1289_v18 = vld [vmem:[%s1980_s1 + $0x40] ss:$8 sps:$4 sm:$0xff]   ;;  %v1291_v20 = vld [vmem:[%s1980_s1 + $0x54] ss:$8 sps:$4 sm:$0xff]   ;;  %v1295_v22 = vld [vmem:[%s1980_s1 + $0x50] ss:$8 sps:$4 sm:$0xff]  }
   0x8   :  { %479 = vmatpush1.bf16.msra.mxu1 %v1272_v7  ;;  %245 = vmatprep.subr.bf16.mxu0 %v1273_v8  ;;  %v1290_v19 = vld [vmem:[%s1981_s2 + $0x40] ss:$8 sps:$4 sm:$0xff]   ;;  %v1293_v21 = vld [vmem:[%s1981_s2 + $0x54] ss:$8 sps:$4 sm:$0xff]   ;;  %v1296_v23 = vld [vmem:[%s1981_s2 + $0x50] ss:$8 sps:$4 sm:$0xff]  }
   0x9   :  { %480 = vmatprep.subr.bf16.mxu1 %v1275_v9  ;;  %v1297_v24 = vld [vmem:[%s1980_s1 + $0x64] ss:$8 sps:$4 sm:$0xff]   ;;  %v1301_v26 = vld [vmem:[%s1980_s1 + $0x60] ss:$8 sps:$4 sm:$0xff]   ;;  %v1303_v28 = vld [vmem:[%s1980_s1 + $0x74] ss:$8 sps:$4 sm:$0xff]  }
   0xa   :  { %v1299_v25 = vld [vmem:[%s1981_s2 + $0x64] ss:$8 sps:$4 sm:$0xff]   ;;  %v1302_v27 = vld [vmem:[%s1981_s2 + $0x60] ss:$8 sps:$4 sm:$0xff]   ;;  %v1305_v29 = vld [vmem:[%s1981_s2 + $0x74] ss:$8 sps:$4 sm:$0xff]  }
   0xb   :  { %246 = vmatpush1.bf16.msra.mxu0 %v1277_v10  ;;  %v1307_v30 = vld [vmem:[%s1980_s1 + $0x70] ss:$8 sps:$4 sm:$0xff]   ;;  %v1309_v32 = vld [vmem:[%s1980_s1 + $0x84] ss:$8 sps:$4 sm:$0xff]   ;;  %v1313_v34 = vld [vmem:[%s1980_s1 + $0x80] ss:$8 sps:$4 sm:$0xff]  }
   0xc   :  { %481 = vmatpush1.bf16.msra.mxu1 %v1278_v11  ;;  %247 = vmatprep.subr.bf16.mxu0 %v1279_v12  ;;  %v1308_v31 = vld [vmem:[%s1981_s2 + $0x70] ss:$8 sps:$4 sm:$0xff]   ;;  %v1311_v33 = vld [vmem:[%s1981_s2 + $0x84] ss:$8 sps:$4 sm:$0xff]   ;;  %v1314_v35 = vld [vmem:[%s1981_s2 + $0x80] ss:$8 sps:$4 sm:$0xff]  }
   0xd   :  { %482 = vmatprep.subr.bf16.mxu1 %v1281_v13  ;;  %v1315_v36 = vld [vmem:[%s1980_s1 + $0x94] ss:$8 sps:$4 sm:$0xff]   ;;  %v1319_v38 = vld [vmem:[%s1980_s1 + $0x90] ss:$8 sps:$4 sm:$0xff]   ;;  %v1321_v40 = vld [vmem:[%s1980_s1 + $0xa4] ss:$8 sps:$4 sm:$0xff]  }
   0xe   :  { %v1317_v37 = vld [vmem:[%s1981_s2 + $0x94] ss:$8 sps:$4 sm:$0xff]   ;;  %v1320_v39 = vld [vmem:[%s1981_s2 + $0x90] ss:$8 sps:$4 sm:$0xff]   ;;  %v1323_v41 = vld [vmem:[%s1981_s2 + $0xa4] ss:$8 sps:$4 sm:$0xff]  }
   0xf   :  { %248 = vmatpush1.bf16.msra.mxu0 %v1283_v14  ;;  %v1325_v42 = vld [vmem:[%s1980_s1 + $0xa0] ss:$8 sps:$4 sm:$0xff]   ;;  %v1327_v44 = vld [vmem:[%s1980_s1 + $0xb4] ss:$8 sps:$4 sm:$0xff]   ;;  %v1359_v46 = vld [vmem:[%s1979_s0 + $0x4] ss:$8 sps:$4 sm:$0xff]  }
  0x10   :  { %483 = vmatpush1.bf16.msra.mxu1 %v1284_v15  ;;  %249 = vmatprep.subr.bf16.mxu0 %v1285_v16  ;;  %v1326_v43 = vld [vmem:[%s1981_s2 + $0xa0] ss:$8 sps:$4 sm:$0xff]   ;;  %v1329_v45 = vld [vmem:[%s1981_s2 + $0xb4] ss:$8 sps:$4 sm:$0xff]   ;;  %v1331_v47 = vld [vmem:[%s1980_s1 + $0xb0] ss:$8 sps:$4 sm:$0xff]  }
  0x11   :  { %484 = vmatprep.subr.bf16.mxu1 %v1287_v17  ;;  %v1332_v48 = vld [vmem:[%s1981_s2 + $0xb0] ss:$8 sps:$4 sm:$0xff]   ;;  %v1333_v49 = vld [vmem:[%s1980_s1 + $0xc4] ss:$8 sps:$4 sm:$0xff]   ;;  %273 = vmatprep.mubr.bf16.mxu0 %v1359_v46  ;;  %v1337_v51 = vld [vmem:[%s1980_s1 + $0xc0] ss:$8 sps:$4 sm:$0xff]  }
  0x12   :  { %v1335_v50 = vld [vmem:[%s1981_s2 + $0xc4] ss:$8 sps:$4 sm:$0xff]   ;;  %508 = vmatprep.mubr.bf16.mxu1 %v1359_v46  ;;  %v1338_v52 = vld [vmem:[%s1981_s2 + $0xc0] ss:$8 sps:$4 sm:$0xff]   ;;  %v1339_v53 = vld [vmem:[%s1980_s1 + $0xd4] ss:$8 sps:$4 sm:$0xff]  }
  0x13   :  { %250 = vmatpush1.bf16.msra.mxu0 %v1289_v18  ;;  %v1341_v54 = vld [vmem:[%s1981_s2 + $0xd4] ss:$8 sps:$4 sm:$0xff]   ;;  %v1343_v55 = vld [vmem:[%s1980_s1 + $0xd0] ss:$8 sps:$4 sm:$0xff]   ;;  %v1345_v57 = vld [vmem:[%s1980_s1 + $0xe4] ss:$8 sps:$4 sm:$0xff]  }
  0x14   :  { %485 = vmatpush1.bf16.msra.mxu1 %v1290_v19  ;;  %251 = vmatprep.subr.bf16.mxu0 %v1291_v20  ;;  %v1344_v56 = vld [vmem:[%s1981_s2 + $0xd0] ss:$8 sps:$4 sm:$0xff]   ;;  %v1347_v58 = vld [vmem:[%s1981_s2 + $0xe4] ss:$8 sps:$4 sm:$0xff]  }
  0x15   :  { %486 = vmatprep.subr.bf16.mxu1 %v1293_v21 }
  0x17   :  { %252 = vmatpush1.bf16.msra.mxu0 %v1295_v22 }
  0x18   :  { %487 = vmatpush1.bf16.msra.mxu1 %v1296_v23  ;;  %253 = vmatprep.subr.bf16.mxu0 %v1297_v24 }
  0x19   :  { %488 = vmatprep.subr.bf16.mxu1 %v1299_v25 }
  0x1b   :  { %254 = vmatpush1.bf16.msra.mxu0 %v1301_v26 }
  0x1c   :  { %489 = vmatpush1.bf16.msra.mxu1 %v1302_v27  ;;  %255 = vmatprep.subr.bf16.mxu0 %v1303_v28 }
  0x1d   :  { %490 = vmatprep.subr.bf16.mxu1 %v1305_v29 }
  0x1f   :  { %256 = vmatpush1.bf16.msra.mxu0 %v1307_v30 }
  0x20   :  { %491 = vmatpush1.bf16.msra.mxu1 %v1308_v31  ;;  %257 = vmatprep.subr.bf16.mxu0 %v1309_v32 }
  0x21   :  { %492 = vmatprep.subr.bf16.mxu1 %v1311_v33 }
  0x23   :  { %258 = vmatpush1.bf16.msra.mxu0 %v1313_v34 }
  0x24   :  { %493 = vmatpush1.bf16.msra.mxu1 %v1314_v35  ;;  %259 = vmatprep.subr.bf16.mxu0 %v1315_v36 }
  0x25   :  { %494 = vmatprep.subr.bf16.mxu1 %v1317_v37 }
  0x27   :  { %260 = vmatpush1.bf16.msra.mxu0 %v1319_v38 }
  0x28   :  { %495 = vmatpush1.bf16.msra.mxu1 %v1320_v39  ;;  %261 = vmatprep.subr.bf16.mxu0 %v1321_v40 }
  0x29   :  { %496 = vmatprep.subr.bf16.mxu1 %v1323_v41 }
  0x2b   :  { %262 = vmatpush1.bf16.msra.mxu0 %v1325_v42 }
  0x2c   :  { %497 = vmatpush1.bf16.msra.mxu1 %v1326_v43  ;;  %263 = vmatprep.subr.bf16.mxu0 %v1327_v44 }
  0x2d   :  { %498 = vmatprep.subr.bf16.mxu1 %v1329_v45 }
  0x2f   :  { %264 = vmatpush1.bf16.msra.mxu0 %v1331_v47 }
  0x30   :  { %499 = vmatpush1.bf16.msra.mxu1 %v1332_v48  ;;  %265 = vmatprep.subr.bf16.mxu0 %v1333_v49 }
  0x31   :  { %500 = vmatprep.subr.bf16.mxu1 %v1335_v50 }
  0x33   :  { %266 = vmatpush1.bf16.msra.mxu0 %v1337_v51 }
  0x34   :  { %501 = vmatpush1.bf16.msra.mxu1 %v1338_v52  ;;  %267 = vmatprep.subr.bf16.mxu0 %v1339_v53 }
  0x35   :  { %502 = vmatprep.subr.bf16.mxu1 %v1341_v54 }
  0x36   :  { %15 = vsyncpa [#allocation3], 0  ;;  %v1349_v59 = vld [vmem:[%s1980_s1 + $0xe0] ss:$8 sps:$4 sm:$0xff]   ;;  %v1351_v61 = vld [vmem:[%s1980_s1 + $0xf4] ss:$8 sps:$4 sm:$0xff]  }
  0x37   :  { %268 = vmatpush1.bf16.msra.mxu0 %v1343_v55  ;;  %v1350_v60 = vld [vmem:[%s1981_s2 + $0xe0] ss:$8 sps:$4 sm:$0xff]   ;;  %v1353_v62 = vld [vmem:[%s1981_s2 + $0xf4] ss:$8 sps:$4 sm:$0xff]   ;;  %v1355_v1 = vld [vmem:[%s1980_s1 + $0xf0] ss:$8 sps:$4 sm:$0xff]  }
  0x38   :  { %503 = vmatpush1.bf16.msra.mxu1 %v1344_v56  ;;  %269 = vmatprep.subr.bf16.mxu0 %v1345_v57  ;;  %v560_v63 = vld [vmem:[%s1987_s8 + $0x8] sm:$0xff]  ;;  %v562_v0 = vld [vmem:[%s1987_s8 + $0x18] sm:$0xff]  ;;  %v559_v4 = vld [vmem:[%s1987_s8] sm:$0xff]  ;;  %vm595_vm0 = vcmask 130048   ;;  %vm803_vm9 = vcmask 523264   ;;  %vm901_vm10 = vcmask 195584  }
  0x39   :  { %504 = vmatprep.subr.bf16.mxu1 %v1347_v58  ;;  %v1356_v2 = vld [vmem:[%s1981_s2 + $0xf0] ss:$8 sps:$4 sm:$0xff]   ;;  %v1180_v3 = vpack.c.bf16 %v562_v0, %v560_v63  ;;  %v564_v6 = vld [vmem:[%s1987_s8 + $0x28] sm:$0xff]  ;;  %v563_v11 = vld [vmem:[%s1987_s8 + $0x20] sm:$0xff]  ;;  %s1429_s23 = smov [#allocation2]  }
  0x3a   :  { %v561_v5 = vld [vmem:[%s1987_s8 + $0x10] sm:$0xff]  ;;  %v566_v7 = vld [vmem:[%s1987_s8 + $0x38] sm:$0xff]  ;;  %v1357_v8 = vld [vmem:[%s1979_s0] ss:$8 sps:$4 sm:$0xff]   ;;  %s1077_s24 = sshll.u32 %s1429_s23, 4  ;;  %s1078_s24 = int_to_ptr.vmem [resolvable:$true] %s1077_s24 }
  0x3b   :  { %270 = vmatpush1.bf16.msra.mxu0 %v1349_v59  ;;  %v1182_v9 = vpack.c.bf16 %v561_v5, %v559_v4  ;;  %v1184_v10 = vpack.c.bf16 %v566_v7, %v564_v6  ;;  %v565_v12 = vld [vmem:[%s1987_s8 + $0x30] sm:$0xff]  ;;  %v568_v13 = vld [vmem:[%s1987_s8 + $0x48] sm:$0xff]  ;;  %v570_v14 = vld [vmem:[%s1987_s8 + $0x58] sm:$0xff]  ;;  %p1408_p1 = scmp.lt.s32.totalorder %s1078_s24, %s1078_s24 }
  0x3c   :  { %505 = vmatpush1.bf16.msra.mxu1 %v1350_v60  ;;  %271 = vmatprep.subr.bf16.mxu0 %v1351_v61  ;;  %v1186_v15 = vpack.c.bf16 %v565_v12, %v563_v11  ;;  %v1188_v16 = vpack.c.bf16 %v570_v14, %v568_v13  ;;  %v567_v17 = vld [vmem:[%s1987_s8 + $0x40] sm:$0xff]  ;;  %v569_v18 = vld [vmem:[%s1987_s8 + $0x50] sm:$0xff]  ;;  %v572_v19 = vld [vmem:[%s1987_s8 + $0x68] sm:$0xff] }
  0x3d   :  { %506 = vmatprep.subr.bf16.mxu1 %v1353_v62  ;;  %v574_v20 = vld [vmem:[%s1987_s8 + $0x78] sm:$0xff]  ;;  %v1190_v21 = vpack.c.bf16 %v569_v18, %v567_v17  ;;  %v571_v23 = vld [vmem:[%s1987_s8 + $0x60] sm:$0xff]  ;;  %v573_v24 = vld [vmem:[%s1987_s8 + $0x70] sm:$0xff] }
  0x3e   :  { %v1192_v22 = vpack.c.bf16 %v574_v20, %v572_v19  ;;  %v1194_v25 = vpack.c.bf16 %v573_v24, %v571_v23  ;;  %v576_v26 = vld [vmem:[%s1987_s8 + $0x88] sm:$0xff]  ;;  %v578_v27 = vld [vmem:[%s1987_s8 + $0x98] sm:$0xff]  ;;  %v575_v29 = vld [vmem:[%s1987_s8 + $0x80] sm:$0xff] }
  0x3f   :  { %272 = vmatpush1.bf16.msra.mxu0 %v1355_v1  ;;  %v1196_v28 = vpack.c.bf16 %v578_v27, %v576_v26  ;;  %v577_v30 = vld [vmem:[%s1987_s8 + $0x90] sm:$0xff]  ;;  %v580_v32 = vld [vmem:[%s1987_s8 + $0xa8] sm:$0xff]  ;;  %v582_v33 = vld [vmem:[%s1987_s8 + $0xb8] sm:$0xff] }
  0x40   :  { %507 = vmatpush1.bf16.msra.mxu1 %v1356_v2  ;;  %1181 = vmatprep.subr.bf16.mxu0 %v1180_v3  ;;  %v1198_v31 = vpack.c.bf16 %v577_v30, %v575_v29  ;;  %v1200_v34 = vpack.c.bf16 %v582_v33, %v580_v32  ;;  %v579_v35 = vld [vmem:[%s1987_s8 + $0xa0] sm:$0xff]  ;;  %v581_v36 = vld [vmem:[%s1987_s8 + $0xb0] sm:$0xff]  ;;  %v584_v38 = vld [vmem:[%s1987_s8 + $0xc8] sm:$0xff]  ;;  %v1427_v32 = vmov 0.0  }
  0x41   :  { %v1202_v37 = vpack.c.bf16 %v581_v36, %v579_v35  ;;  %v586_v39 = vld [vmem:[%s1987_s8 + $0xd8] sm:$0xff]  ;;  %v583_v41 = vld [vmem:[%s1987_s8 + $0xc0] sm:$0xff]  ;;  %v585_v42 = vld [vmem:[%s1987_s8 + $0xd0] sm:$0xff] }
  0x42   :  { %274 = vmatmul.mubr.bf16.vlgmr.msra.gmra.mrb[0].mxu0 %v1357_v8  ;;  %v1204_v40 = vpack.c.bf16 %v586_v39, %v584_v38  ;;  %v588_v43 = vld [vmem:[%s1987_s8 + $0xe8] sm:$0xff]  ;;  %v1206_v44 = vpack.c.bf16 %v585_v42, %v583_v41  ;;  %v590_v45 = vld [vmem:[%s1987_s8 + $0xf8] sm:$0xff]  ;;  %v587_v46 = vld [vmem:[%s1987_s8 + $0xe0] sm:$0xff] }
  0x43   :  { %509 = vmatmul.mubr.bf16.vlgmr.msra.gmra.mrb[0].mxu1 %v1357_v8  ;;  %1183 = vmatpush1.bf16.msra.mxu0 %v1182_v9  ;;  %v589_v47 = vld [vmem:[%s1987_s8 + $0xf0] sm:$0xff]  ;;  %v1208_v48 = vpack.c.bf16 %v590_v45, %v588_v43  ;;  %v592_v49 = vld [vmem:[%s1987_s8 + $0x108] sm:$0xff]  ;;  %v594_v50 = vld [vmem:[%s1987_s8 + $0x118] sm:$0xff] }
  0x44   :  { %1185 = vmatprep.subr.bf16.mxu0 %v1184_v10  ;;  %v1210_v51 = vpack.c.bf16 %v589_v47, %v587_v46  ;;  %v1212_v52 = vpack.c.bf16 %v594_v50, %v592_v49  ;;  %v591_v53 = vld [vmem:[%s1987_s8 + $0x100] sm:$0xff]  ;;  %v593_v54 = vld [vmem:[%s1987_s8 + $0x110] sm:$0xff]  ;;  %759 = vmatprep.mubr.f32.mxu1 %v1427_v32  ;;  %v682_v38 = vld [vmem:[%s1985_s6 + $0x18] sm:$0xff] }
  0x45   :  { %v1214_v55 = vpack.c.bf16 %v593_v54, %v591_v53  ;;  %v679_v35 = vld [vmem:[%s1985_s6] sm:$0xff]  ;;  %v681_v36 = vld [vmem:[%s1985_s6 + $0x10] sm:$0xff]  ;;  %v775_v53 = vld [vmem:[%s1984_s5 + $0x18] sm:$0xff] }
  0x46   :  { %v772_v47 = vld [vmem:[%s1984_s5] sm:$0xff]  ;;  %v688_v54 = vld [vmem:[%s1983_s4 + $0x8] sm:$0xff] }
  0x47   :  { %1187 = vmatpush1.bf16.msra.mxu0 %v1186_v15  ;;  %v687_v49 = vld [vmem:[%s1983_s4] sm:$0xff] }
  0x48   :  { %1189 = vmatprep.subr.bf16.mxu0 %v1188_v16 }
  0x4b   :  { %1191 = vmatpush1.bf16.msra.mxu0 %v1190_v21 }
  0x4c   :  { %1193 = vmatprep.subr.bf16.mxu0 %v1192_v22 }
  0x4f   :  { %1195 = vmatpush1.bf16.msra.mxu0 %v1194_v25 }
  0x50   :  { %1197 = vmatprep.subr.bf16.mxu0 %v1196_v28 }
  0x53   :  { %1199 = vmatpush1.bf16.msra.mxu0 %v1198_v31 }
  0x54   :  { %1201 = vmatprep.subr.bf16.mxu0 %v1200_v34 }
  0x57   :  { %1203 = vmatpush1.bf16.msra.mxu0 %v1202_v37  ;;  %v680_v37 = vld [vmem:[%s1985_s6 + $0x8] sm:$0xff] }
  0x58   :  { %1205 = vmatprep.subr.bf16.mxu0 %v1204_v40 }
  0x5b   :  { %1207 = vmatpush1.bf16.msra.mxu0 %v1206_v44 }
  0x5c   :  { %1209 = vmatprep.subr.bf16.mxu0 %v1208_v48  ;;  %v773_v48 = vld [vmem:[%s1984_s5 + $0x8] sm:$0xff] }
  0x5d   :  { %v1221_v50 = vpack.c.bf16 %v773_v48, %v772_v47 }
  0x5f   :  { %1211 = vmatpush1.bf16.msra.mxu0 %v1210_v51  ;;  %v1428_v51 = vmov 0.0|0.0  }
  0x60   :  { %1213 = vmatprep.subr.bf16.mxu0 %v1212_v52  ;;  %v774_v52 = vld [vmem:[%s1984_s5 + $0x10] sm:$0xff] }
  0x63   :  { %1215 = vmatpush1.bf16.msra.mxu0 %v1214_v55  ;;  %v1224_v55 = vpack.c.bf16 %v775_v53, %v774_v52 }
 0x115   :  { %v275_v56 = vpop.f32.mrb[0].mxu0 }
 0x116   :  { %v510_v57 = vpop.f32.mrb[0].mxu1  ;;  %v519_v58 = vmul.f32 %v275_v56, %v275_v56  ;;  %v277_v60 = vpop.f32.mrb[1].mxu0  ;;  %v776_v56 = vld [vmem:[%s1984_s5 + $0x20] sm:$0xff] }
 0x117   :  { %v523_v59 = vmul.f32 %v510_v57, %v510_v57  ;;  %v512_v61 = vpop.f32.mrb[1].mxu1  ;;  %v520_v62 = vmul.f32 %v277_v60, %v277_v60  ;;  %v279_v0 = vpop.f32.mrb[2].mxu0  ;;  %v777_v57 = vld [vmem:[%s1984_s5 + $0x28] sm:$0xff]  ;;  %v779_v60 = vld [vmem:[%s1984_s5 + $0x38] sm:$0xff] }
 0x118   :  { %v524_v63 = vmul.f32 %v512_v61, %v512_v61  ;;  %v514_v1 = vpop.f32.mrb[2].mxu1  ;;  %v521_v3 = vmul.f32 %v279_v0, %v279_v0  ;;  %v281_v5 = vpop.f32.mrb[3].mxu0 }
 0x119   :  { %v527_v2 = vadd.f32 %v523_v59, %v519_v58  ;;  %v525_v4 = vmul.f32 %v514_v1, %v514_v1  ;;  %v516_v6 = vpop.f32.mrb[3].mxu1  ;;  %v522_v8 = vmul.f32 %v281_v5, %v281_v5  ;;  %v1227_v58 = vpack.c.bf16 %v777_v57, %v776_v56  ;;  %v778_v59 = vld [vmem:[%s1984_s5 + $0x30] sm:$0xff]  ;;  %v785_v5 = vld [vmem:[%s1984_s5 + $0x68] sm:$0xff] }
 0x11a   :  { %v528_v7 = vadd.f32 %v524_v63, %v520_v62  ;;  %v526_v9 = vmul.f32 %v516_v6, %v516_v6  ;;  %v1230_v61 = vpack.c.bf16 %v779_v60, %v778_v59  ;;  %v780_v62 = vld [vmem:[%s1984_s5 + $0x40] sm:$0xff]  ;;  %v781_v63 = vld [vmem:[%s1984_s5 + $0x48] sm:$0xff]  ;;  %v782_v1 = vld [vmem:[%s1984_s5 + $0x50] sm:$0xff] }
 0x11b   :  { %1387 = vrsqrt.f32 %v527_v2  ;;  %v529_v10 = vadd.f32 %v525_v4, %v521_v3  ;;  %vm533_vm1 = vcmp.eq.f32.partialorder %v527_v2, inf  ;;  %v536_v22 = vand.u32 2147483648, %v527_v2  ;;  %v784_v4 = vld [vmem:[%s1984_s5 + $0x60] sm:$0xff] }
 0x11c   :  { %1389 = vrsqrt.f32 %v528_v7  ;;  %v530_v11 = vadd.f32 %v526_v9, %v522_v8  ;;  %vm540_vm2 = vcmp.eq.f32.partialorder %v528_v7, inf  ;;  %v543_v18 = vand.u32 2147483648, %v528_v7  ;;  %v787_v8 = vld [vmem:[%s1984_s5 + $0x78] sm:$0xff]  ;;  %v897_v59 = vld [vmem:[%s1986_s7] sm:$0xff] }
 0x11d   :  { %1391 = vrsqrt.f32 %v529_v10  ;;  %vm542_vm3 = vcmp.eq.f32.partialorder %v528_v7, 0.0  ;;  %vm535_vm4 = vcmp.eq.f32.partialorder %v527_v2, 0.0  ;;  %vm547_vm7 = vcmp.eq.f32.partialorder %v529_v10, inf }
 0x11e   :  { %1393 = vrsqrt.f32 %v530_v11  ;;  %vm554_vm5 = vcmp.eq.f32.partialorder %v530_v11, inf  ;;  %v557_v25 = vand.u32 2147483648, %v530_v11  ;;  %vm556_vm6 = vcmp.eq.f32.partialorder %v530_v11, 0.0 }
 0x11f   :  { %v550_v30 = vand.u32 2147483648, %v529_v10  ;;  %vm549_vm8 = vcmp.eq.f32.partialorder %v529_v10, 0.0  ;;  %v1233_v0 = vpack.c.bf16 %v781_v63, %v780_v62  ;;  %v1239_v6 = vpack.c.bf16 %v785_v5, %v784_v4  ;;  %v898_v62 = vld [vmem:[%s1986_s7 + $0x8] sm:$0xff]  ;;  %v1383_v4 = vld [vmem:[%s1982_s3 + $0x74] ss:$8 sps:$4 sm:$0xff]  }
 0x120   :  { %v1386_v5 = vld [vmem:[%s1982_s3 + $0x84] ss:$8 sps:$4 sm:$0xff]  }
 0x125   :  { %v1388_v12 = vpop.eup %1387 }
 0x126   :  { %v1390_v13 = vpop.eup %1389  ;;  %v532_v14 = vmul.f32 %v1388_v12, %v527_v2 }
 0x127   :  { %v1392_v15 = vpop.eup %1391  ;;  %v539_v16 = vmul.f32 %v1390_v13, %v528_v7  ;;  %v790_v13 = vld [vmem:[%s1984_s5 + $0x90] sm:$0xff] }
 0x128   :  { %v1394_v17 = vpop.eup %1393  ;;  %v534_v19 = vsel %vm533_vm1, %v527_v2, %v532_v14  ;;  %v546_v20 = vmul.f32 %v1392_v15, %v529_v10  ;;  %v783_v2 = vld [vmem:[%s1984_s5 + $0x58] sm:$0xff] }
 0x129   :  { %v541_v21 = vsel %vm540_vm2, %v528_v7, %v539_v16  ;;  %v553_v23 = vmul.f32 %v1394_v17, %v530_v11  ;;  %v1797_v26 = vsel %vm535_vm4, %v536_v22, %v534_v19  ;;  %v1236_v3 = vpack.c.bf16 %v783_v2, %v782_v1  ;;  %v786_v7 = vld [vmem:[%s1984_s5 + $0x70] sm:$0xff]  ;;  %v791_v14 = vld [vmem:[%s1984_s5 + $0x98] sm:$0xff]  ;;  %v792_v16 = vld [vmem:[%s1984_s5 + $0xa0] sm:$0xff] }
 0x12a   :  { %v1793_v24 = vsel %vm542_vm3, %v543_v18, %v541_v21  ;;  %v548_v29 = vsel %vm547_vm7, %v529_v10, %v546_v20  ;;  %v1242_v9 = vpack.c.bf16 %v787_v8, %v786_v7  ;;  %v788_v10 = vld [vmem:[%s1984_s5 + $0x80] sm:$0xff]  ;;  %v1248_v15 = vpack.c.bf16 %v791_v14, %v790_v13  ;;  %v793_v17 = vld [vmem:[%s1984_s5 + $0xa8] sm:$0xff]  ;;  %v794_v19 = vld [vmem:[%s1984_s5 + $0xb0] sm:$0xff] }
 0x12b   :  { %1154 = vmatprep.mubr.msk.f32.mxu0 %vm595_vm0, %v1793_v24  ;;  %v555_v27 = vsel %vm554_vm5, %v530_v11, %v553_v23  ;;  %v1804_v31 = vsel %vm549_vm8, %v550_v30, %v548_v29  ;;  %v789_v11 = vld [vmem:[%s1984_s5 + $0x88] sm:$0xff]  ;;  %v1251_v18 = vpack.c.bf16 %v793_v17, %v792_v16  ;;  %v795_v20 = vld [vmem:[%s1984_s5 + $0xb8] sm:$0xff] }
 0x12c   :  { %667 = vmatmul.mubr.f32.vlgmr.msra.gmra.mrb[4].mxu0 %v1797_v26  ;;  %v1800_v28 = vsel %vm556_vm6, %v557_v25, %v555_v27  ;;  %v1245_v12 = vpack.c.bf16 %v789_v11, %v788_v10  ;;  %v1254_v21 = vpack.c.bf16 %v795_v20, %v794_v19  ;;  %v1360_v29 = vld [vmem:[%s1982_s3] ss:$8 sps:$4 sm:$0xff]   ;;  %v1362_v30 = vld [vmem:[%s1982_s3 + $0x4] ss:$8 sps:$4 sm:$0xff]  }
 0x12d   :  { %1155 = vmatprep.mubr.msk.f32.mxu0 %vm595_vm0, %v1800_v28  ;;  %1025 = vmatprep.subr.bf16.mxu0 %v1362_v30 }
 0x12e   :  { %1026 = vmatpush1.bf16.msra.mxu0 %v1360_v29 }
 0x130   :  { %673 = vmatmul.mubr.f32.gmra.mrb[6].mxu0 %v1804_v31 }
 0x1ff   :  { %v668_v33 = vpop.f32.mrb[4].mxu0 }
 0x200   :  { %v670_v34 = vpop.f32.mrb[5].mxu0  ;;  %v683_v40 = vmul.f32 %v679_v35, %v668_v33  ;;  %v1363_v33 = vld [vmem:[%s1982_s3 + $0x10] ss:$8 sps:$4 sm:$0xff]   ;;  %v1366_v35 = vld [vmem:[%s1982_s3 + $0x20] ss:$8 sps:$4 sm:$0xff]  }
 0x201   :  { %v684_v43 = vmul.f32 %v680_v37, %v670_v34  ;;  %v1368_v34 = vld [vmem:[%s1982_s3 + $0x24] ss:$8 sps:$4 sm:$0xff]   ;;  %v1369_v37 = vld [vmem:[%s1982_s3 + $0x30] ss:$8 sps:$4 sm:$0xff]  }
 0x203   :  { %v674_v39 = vpop.f32.mrb[6].mxu0 }
 0x204   :  { %v685_v41 = vmul.f32 %v681_v36, %v674_v39  ;;  %v676_v42 = vpop.f32.mrb[7].mxu0  ;;  %v1371_v36 = vld [vmem:[%s1982_s3 + $0x34] ss:$8 sps:$4 sm:$0xff]   ;;  %v1372_v39 = vld [vmem:[%s1982_s3 + $0x40] ss:$8 sps:$4 sm:$0xff]  }
 0x205   :  { %v686_v44 = vmul.f32 %v682_v38, %v676_v42  ;;  %v1374_v38 = vld [vmem:[%s1982_s3 + $0x44] ss:$8 sps:$4 sm:$0xff]  }
 0x206   :  { %v1218_v45 = vpack.c.bf16 %v685_v41, %v683_v40  ;;  %v1377_v40 = vld [vmem:[%s1982_s3 + $0x54] ss:$8 sps:$4 sm:$0xff]   ;;  %v1375_v41 = vld [vmem:[%s1982_s3 + $0x50] ss:$8 sps:$4 sm:$0xff]   ;;  %v1380_v42 = vld [vmem:[%s1982_s3 + $0x64] ss:$8 sps:$4 sm:$0xff]  }
 0x207   :  { %v1216_v46 = vpack.c.bf16 %v686_v44, %v684_v43  ;;  %v1378_v43 = vld [vmem:[%s1982_s3 + $0x60] ss:$8 sps:$4 sm:$0xff]  }
 0x208   :  { %v1158_v44 = vld [vmem:[%s1988_s9] ss:$0 sm:$0xff] }
 0x209   :  { %1217 = vmatprep.subr.bf16.mxu1 %v1216_v46 }
 0x20a   :  { %1219 = vmatpush1.bf16.msra.mxu1 %v1218_v45 }
 0x20b   :  { %1220 = vmatprep.subr.bf16.mxu1 %v1428_v51 }
 0x20d   :  { %1156 = vmatmul.mubr.msk.f32.vlgmr.msra.gmra.mrb[4].mxu1 %vm595_vm0, %v687_v49 }
 0x20e   :  { %765 = vmatprep.mubr.f32.mxu1 %v1427_v32  ;;  %1222 = vmatpush1.bf16.msra.mxu1 %v1221_v50  ;;  %v1365_v32 = vld [vmem:[%s1982_s3 + $0x14] ss:$8 sps:$4 sm:$0xff]  }
 0x20f   :  { %1223 = vmatprep.subr.bf16.mxu1 %v1428_v51  ;;  %1027 = vmatprep.subr.bf16.mxu0 %v1365_v32 }
 0x210   :  { %1028 = vmatpush1.bf16.msra.mxu0 %v1363_v33 }
 0x211   :  { %1157 = vmatmul.mubr.msk.f32.gmra.mrb[6].mxu1 %vm595_vm0, %v688_v54  ;;  %1029 = vmatprep.subr.bf16.mxu0 %v1368_v34 }
 0x212   :  { %1225 = vmatpush1.bf16.msra.mxu1 %v1224_v55 }
 0x213   :  { %1226 = vmatprep.subr.bf16.mxu1 %v1428_v51 }
 0x214   :  { %1030 = vmatpush1.bf16.msra.mxu0 %v1366_v35 }
 0x215   :  { %1031 = vmatprep.subr.bf16.mxu0 %v1371_v36 }
 0x216   :  { %1228 = vmatpush1.bf16.msra.mxu1 %v1227_v58 }
 0x217   :  { %1229 = vmatprep.subr.bf16.mxu1 %v1428_v51 }
 0x218   :  { %1032 = vmatpush1.bf16.msra.mxu0 %v1369_v37 }
 0x219   :  { %1033 = vmatprep.subr.bf16.mxu0 %v1374_v38 }
 0x21a   :  { %1231 = vmatpush1.bf16.msra.mxu1 %v1230_v61 }
 0x21b   :  { %1232 = vmatprep.subr.bf16.mxu1 %v1428_v51 }
 0x21c   :  { %1034 = vmatpush1.bf16.msra.mxu0 %v1372_v39 }
 0x21d   :  { %1035 = vmatprep.subr.bf16.mxu0 %v1377_v40 }
 0x21e   :  { %1234 = vmatpush1.bf16.msra.mxu1 %v1233_v0 }
 0x21f   :  { %1235 = vmatprep.subr.bf16.mxu1 %v1428_v51 }
 0x220   :  { %1036 = vmatpush1.bf16.msra.mxu0 %v1375_v41 }
 0x221   :  { %1037 = vmatprep.subr.bf16.mxu0 %v1380_v42 }
 0x222   :  { %1237 = vmatpush1.bf16.msra.mxu1 %v1236_v3  ;;  %v1381_v3 = vld [vmem:[%s1982_s3 + $0x70] ss:$8 sps:$4 sm:$0xff]  }
 0x223   :  { %1238 = vmatprep.subr.bf16.mxu1 %v1428_v51 }
 0x224   :  { %1038 = vmatpush1.bf16.msra.mxu0 %v1378_v43 }
 0x225   :  { %1039 = vmatprep.subr.bf16.mxu0 %v1383_v4 }
 0x226   :  { %1240 = vmatpush1.bf16.msra.mxu1 %v1239_v6  ;;  %v1384_v6 = vld [vmem:[%s1982_s3 + $0x80] ss:$8 sps:$4 sm:$0xff]   ;;  %s1403_s3 = scalar_lea.vmem %s1078_s24, 512 }
 0x227   :  { %1241 = vmatprep.subr.bf16.mxu1 %v1428_v51  ;;  %p1404_p0 = scmp.ne.s32.totalorder %s1078_s24, %s1403_s3  ;;  %p1409_p2 = scmp.lt.s32.totalorder %s1403_s3, %s1403_s3 }
 0x228   :  { %1040 = vmatpush1.bf16.msra.mxu0 %v1381_v3 }
 0x229   :  { %1041 = vmatprep.subr.bf16.mxu0 %v1386_v5  ;;  %p1410_p3 = por %p1409_p2, %p1408_p1 }
 0x22a   :  { %1243 = vmatpush1.bf16.msra.mxu1 %v1242_v9 }
 0x22b   :  { %1244 = vmatprep.subr.bf16.mxu1 %v1428_v51  ;;  %p1411_p4 = pnand %p1410_p3, %p1404_p0 }
 0x22c   :  { %1042 = vmatpush1.bf16.msra.mxu0 %v1384_v6 }
 0x22e   :  { %1246 = vmatpush1.bf16.msra.mxu1 %v1245_v12 }
 0x22f   :  { %1247 = vmatprep.subr.bf16.mxu1 %v1428_v51 }
 0x232   :  { %1249 = vmatpush1.bf16.msra.mxu1 %v1248_v15 }
 0x233   :  { %1250 = vmatprep.subr.bf16.mxu1 %v1428_v51 }
 0x236   :  { %1252 = vmatpush1.bf16.msra.mxu1 %v1251_v18 }
 0x237   :  { %1253 = vmatprep.subr.bf16.mxu1 %v1428_v51 }
 0x23a   :  { %1255 = vmatpush1.bf16.msra.mxu1 %v1254_v21 }
 0x2e0   :  { %v761_v22 = vpop.f32.mrb[4].mxu1 }
 0x2e1   :  { %v763_v23 = vpop.f32.mrb[5].mxu1 }
 0x2e2   :  { %1159 = vmatprep.mubr.msk.f32.mxu1 %vm803_vm9, %v763_v23 }
 0x2e3   :  { %875 = vmatmul.mubr.f32.vlgmr.msra.gmra.mrb[8].mxu1 %v761_v22 }
 0x2e4   :  { %v767_v25 = vpop.f32.mrb[6].mxu1 }
 0x2e5   :  { %v769_v27 = vpop.f32.mrb[7].mxu1 }
 0x2e6   :  { %1160 = vmatprep.mubr.msk.f32.mxu1 %vm803_vm9, %v769_v27 }
 0x2e7   :  { %880 = vmatmul.mubr.f32.gmra.mrb[10].mxu1 %v767_v25 }
 0x3b6   :  { %v876_v45 = vpop.f32.mrb[8].mxu1 }
 0x3b7   :  { %v877_v46 = vadd.f32 %v1158_v44, %v876_v45  ;;  %v878_v47 = vpop.f32.mrb[9].mxu1 }
 0x3b9   :  { %v885_v48 = vsub.f32 0.0, %v877_v46 }
 0x3ba   :  { %v881_v49 = vpop.f32.mrb[10].mxu1 }
 0x3bb   :  { %v887_v50 = vmul.f32 1.442695, %v885_v48  ;;  %v882_v51 = vadd.f32 %v1158_v44, %v881_v49  ;;  %v883_v52 = vpop.f32.mrb[11].mxu1 }
 0x3bd   :  { %1395 = vpow2.f32 %v887_v50  ;;  %v886_v53 = vsub.f32 0.0, %v882_v51 }
 0x3bf   :  { %v889_v54 = vmul.f32 1.442695, %v886_v53 }
 0x3c1   :  { %1397 = vpow2.f32 %v889_v54 }
 0x3c7   :  { %v1396_v55 = vpop.eup %1395 }
 0x3c8   :  { %v891_v56 = vadd.f32 1.0, %v1396_v55 }
 0x3ca   :  { %1399 = vrcp.f32 %v891_v56 }
 0x3cb   :  { %v1398_v57 = vpop.eup %1397 }
 0x3cc   :  { %v892_v58 = vadd.f32 1.0, %v1398_v57 }
 0x3ce   :  { %1401 = vrcp.f32 %v892_v58 }
 0x3d4   :  { %v1400_v60 = vpop.eup %1399 }
 0x3d5   :  { %v899_v61 = vmul.f32 %v1400_v60, %v897_v59 }
 0x3d7   :  { %v902_v63 = vsel %vm901_vm10, %v899_v61, 0.0 }
 0x3d8   :  { %v1402_v0 = vpop.eup %1401  ;;  %903 = vadd.xlane.f32.xlu0 %v902_v63 }
 0x3d9   :  { %v900_v1 = vmul.f32 %v1402_v0, %v898_v62 }
 0x3db   :  { %v905_v2 = vsel %vm901_vm10, %v900_v1, 0.0 }
 0x3dc   :  { %906 = vadd.xlane.f32.xlu0 %v905_v2 }
 0x465   :  { %v904_v7 = vpop.xlane.xlu0 %903 }
 0x466   :  { %v908_v9 = vmul.f32 %v904_v7, %v1797_v26  ;;  %v909_v10 = vmul.f32 %v904_v7, %v1793_v24 }
 0x469   :  { %v907_v8 = vpop.xlane.xlu0 %906 }
 0x46a   :  { %v910_v11 = vmul.f32 %v907_v8, %v1804_v31  ;;  %v911_v12 = vmul.f32 %v907_v8, %v1800_v28 }
 0x46c   :  { %v912_v13 = vpack.c.bf16 %v910_v11, %v908_v9  ;;  %v913_v14 = vpack.c.bf16 %v911_v12, %v909_v10 }
 0x46e   :  { %1179 = vmatprep.mubr.msk.bf16.mxu0 %vm595_vm0, %v913_v14 }
 0x46f   :  { %1058 = vmatmul.mubr.bf16.vlgmr.msra.gmra.mrb[8].mxu0 %v912_v13 }
 0x542   :  { %v1059_v15 = vpop.f32.mrb[8].mxu0 }
 0x543   :  { %1068 = vst [vmem:[#allocation2] sm:$0xff] %v1059_v15  ;;  %v1061_v16 = vpop.f32.mrb[9].mxu0 }
 0x544   :  { %1069 = vst [vmem:[#allocation2 + $0x8] sm:$0xff] %v1061_v16  ;;  %v1063_v17 = vpop.f32.mrb[10].mxu0 }
 0x545   :  { %1070 = vst [vmem:[#allocation2 + $0x10] sm:$0xff] %v1063_v17  ;;  %v1065_v26 = vpop.f32.mrb[11].mxu0 }
 0x546   :  { %1071 = vst [vmem:[#allocation2 + $0x18] sm:$0xff] %v1065_v26 }
 0x547   :  { %1414 = shalt.err (!%p1411_p4)
}
 0x548   :  { %s1415_s27 = scalar_lea.hbm %s1989_s10, 512 }
 0x549   :  { %p1416_p5 = scmp.ne.s32.totalorder %s1989_s10, %s1415_s27  ;;  %p1419_p6 = scmp.lt.u32.totalorder %s1415_s27, %s1989_s10 }
 0x54b   :  { %p1421_p7 = pnand %p1419_p6, %p1416_p5 }
 0x54d   :  { %1424 = shalt.err (!%p1421_p7)
}
 0x54e   :  { %s1430_s30 = smov 256   ;;  %s1431_s11 = smov 16  }
 0x54f   :  { %1083 = dma.vmem_to_hbm [thread:$0]  %s1078_s24, 512, %s1989_s10, [#allocation3], %s1430_s30, %s1430_s30, %s1431_s11  }
 0x550   :  { %1425 = dma.done.wait [#allocation3], 512  }
 0x551   :  { %1426 = vsyncadd [#allocation3], 4294966784 }
 0x552   :  { %1087 = vsyncpa [#allocation3], 1 }

</bundles_post_ra>
